<compile_context>
chip_gen: v6e
topology: v6e:2x2x1
jax: 0.10.0
libtpu: 0.0.40
codegen_flags: <defaults>
</compile_context>

<pallas_src>
import numpy as np
import jax
import jax.numpy as jnp
from jax.experimental import pallas as pl
from jax.experimental.pallas import tpu as pltpu


def _sinusoidal_table(layer_num: int, emb_dims: int) -> jnp.ndarray:
    """Deterministic (non-train) embedding table, identical to the PyTorch init."""
    code = np.array(
        [
            [pos / np.power(10000, 2.0 * (j // 2) / emb_dims) for j in range(emb_dims)]
            for pos in range(layer_num)
        ]
    )
    code[:, 0::2] = np.sin(code[:, 0::2])
    code[:, 1::2] = np.cos(code[:, 1::2])
    return jnp.asarray(code, dtype=jnp.float32)


def _layer_enc_kernel(xlen_ref, icode_ref, pos_ref, out_ref):
    # xlen_ref:  (TB, 1)   int32   per-batch valid prefix length
    # icode_ref: (1, L*E)  out_dtype, layer-code row tiled across L (invariant)
    # pos_ref:   (1, L*E)  int32, column c -> sequence position c // E (invariant)
    # out_ref:   (TB, L*E) lane-dense output slab
    mask = pos_ref[...] < xlen_ref[...]                     # (TB, L*E) via broadcast
    out_ref[...] = jnp.where(mask, icode_ref[...], 0.0).astype(out_ref.dtype)


# Pipelined-footprint target for the double-buffered output tile.  24 MiB is
# comfortably inside v7x's 64 MiB physical VMEM and far under v5e/v6e's 128 MiB.
_VMEM_PIPE_BUDGET_BYTES = 24 << 20
# Scoped-VMEM limit: above the 16/32 MiB defaults, below v7x's 64 MiB physical.
_VMEM_LIMIT_BYTES = 48 << 20


def _pick_tb(B: int, out_row_bytes: int) -> int:
    """VMEM-aware batch-tile size.

    TB is the sublane (second-minor) dim of the (TB, L*E) output block, so it
    must be a multiple of 8 (full-width vst, (8,128) BlockSpec rule) or equal
    to B.  Pick the largest such TB whose double-buffered output footprint
    stays inside the pipelined-VMEM budget.
    """
    per_b = 2 * out_row_bytes + 8  # 2x-buffered output row + x_len entry
    max_tb = max(1, _VMEM_PIPE_BUDGET_BYTES // per_b)
    if B <= 8:
        return B                       # block dim == full array dim: always legal
    tb = min(B, max_tb)
    tb = max(8, (tb // 8) * 8)         # multiple of 8; partial last block via cdiv
    return min(tb, B)


def layer_enc_forward(x: jnp.ndarray, i, table: jnp.ndarray,
                      out_dtype=jnp.float32) -> jnp.ndarray:
    """Pallas implementation of LayerEnc.forward(x, i).

    x: (B, L, D) or (B, L); i: layer index; table: (layer_num, E).
    Returns (B, L, E) in `out_dtype` (float32 by default, matching PyTorch).
    """
    assert x.ndim in (2, 3)
    B, L = x.shape[0], x.shape[1]
    layer_num, E = table.shape
    LE = L * E

    # ---- loop-invariant / per-batch scalars computed once in the wrapper ----
    # Faithful to PyTorch: sums accumulate in x's own dtype; a row whose
    # features cancel to exactly 0 counts as padding.
    if x.ndim == 3:
        x_len = jnp.sum(jnp.sum(x, axis=2) != 0, axis=1).astype(jnp.int32)
    else:
        x_len = jnp.sum(x != 0, axis=1).astype(jnp.int32)
    x_len = x_len.reshape(B, 1)

    # Layer-code row tiled across L, and column -> sequence-position map.
    # Both are grid-invariant: constant index_map keeps them resident in VMEM.
    icode_row = jnp.tile(table[i].astype(out_dtype), (L,)).reshape(1, LE)
    pos_row = jnp.asarray((np.arange(LE, dtype=np.int32) // E).reshape(1, LE))

    TB = _pick_tb(B, LE * jnp.dtype(out_dtype).itemsize)
    grid = (pl.cdiv(B, TB),)
    # NOTE: on v7x (2 TCs) an even grid splits the "parallel" axis evenly; we
    # don't shrink TB to force that since it costs v5e/v6e (1 TC) throughput.

    out_flat = pl.pallas_call(
        _layer_enc_kernel,
        out_shape=jax.ShapeDtypeStruct((B, LE), out_dtype),
        grid_spec=pltpu.PrefetchScalarGridSpec(
            num_scalar_prefetch=0,
            grid=grid,
            in_specs=[
                pl.BlockSpec((TB, 1), lambda b: (b, 0)),     # x_len
                pl.BlockSpec((1, LE), lambda b: (0, 0)),     # icode_row (invariant)
                pl.BlockSpec((1, LE), lambda b: (0, 0)),     # pos_row   (invariant)
            ],
            out_specs=pl.BlockSpec((TB, LE), lambda b: (b, 0)),
        ),
        compiler_params=pltpu.CompilerParams(
            dimension_semantics=("parallel",),
            vmem_limit_bytes=_VMEM_LIMIT_BYTES,
        ),
    )(x_len, icode_row, pos_row)

    return out_flat.reshape(B, L, E)


def _reference(x: np.ndarray, i: int, table: np.ndarray) -> np.ndarray:
    """Pure-numpy port of the PyTorch forward, for correctness checking."""
    if x.ndim == 2:
        x_lens = np.sign(np.abs(x)).sum(1).astype(np.int64)
    else:
        x_lens = np.sign(np.abs(x.sum(2))).sum(1).astype(np.int64)
    B, L = x.shape[0], x.shape[1]
    E = table.shape[1]
    out = np.zeros((B, L, E), dtype=np.float32)
    for j, xl in enumerate(x_lens):
        out[j, :xl, :] = table[i]
    return out


if __name__ == "__main__":
    layer_num = 6
    emb_dims = 32
    layer_idx = 3
    table = _sinusoidal_table(layer_num, emb_dims)

    key = jax.random.PRNGKey(0)

    # --- small demo shape (B=2, L=8, D=16): TB == B (< 8) path ---
    B, L, D = 2, 8, 16
    x = jax.random.normal(key, (B, L, D), dtype=jnp.float32)
    x = x.at[0, 5:, :].set(0.0)
    x = x.at[1, 3:, :].set(0.0)

    out = jax.block_until_ready(layer_enc_forward(x, layer_idx, table))
    ref = _reference(np.asarray(x), layer_idx, np.asarray(table))
    np.testing.assert_allclose(np.asarray(out), ref, rtol=1e-6, atol=1e-6)

    # --- multiple-of-8 tile path: B=16 -> TB=16, grid=(1,) ---
    B2 = 16
    x2 = jax.random.normal(jax.random.PRNGKey(1), (B2, L, D), dtype=jnp.float32)
    x2 = x2.at[0, 6:, :].set(0.0)
    x2 = x2.at[5, 2:, :].set(0.0)
    x2 = x2.at[11, :, :].set(0.0)

    out2 = jax.block_until_ready(layer_enc_forward(x2, layer_idx, table))
    ref2 = _reference(np.asarray(x2), layer_idx, np.asarray(table))
    np.testing.assert_allclose(np.asarray(out2), ref2, rtol=1e-6, atol=1e-6)

    # --- non-multiple-of-8 batch: B=12 -> TB=8, cdiv grid with partial block ---
    B3 = 12
    x3 = jax.random.normal(jax.random.PRNGKey(2), (B3, L, D), dtype=jnp.float32)
    x3 = x3.at[2, 4:, :].set(0.0)
    x3 = x3.at[9, 1:, :].set(0.0)

    out3 = jax.block_until_ready(layer_enc_forward(x3, layer_idx, table))
    ref3 = _reference(np.asarray(x3), layer_idx, np.asarray(table))
    np.testing.assert_allclose(np.asarray(out3), ref3, rtol=1e-6, atol=1e-6)

    # --- 2-D input path (per-element nonzero count) ---
    x4 = jax.random.normal(jax.random.PRNGKey(3), (4, L), dtype=jnp.float32)
    x4 = x4.at[0, 5:].set(0.0)
    x4 = x4.at[3, 2:].set(0.0)

    out4 = jax.block_until_ready(layer_enc_forward(x4, layer_idx, table))
    ref4 = _reference(np.asarray(x4), layer_idx, np.asarray(table))
    np.testing.assert_allclose(np.asarray(out4), ref4, rtol=1e-6, atol=1e-6)

    print("KERNEL_OK")
</pallas_src>

<mosaic_0001>
module attributes {stable_mosaic.version = 11 : i64} {
  func.func @_layer_enc_kernel(%arg0: i32, %arg1: memref<2x1xi32, #tpu.memory_space<vmem>>, %arg2: memref<1x256xf32, #tpu.memory_space<vmem>>, %arg3: memref<1x256xi32, #tpu.memory_space<vmem>>, %arg4: memref<2x256xf32, #tpu.memory_space<vmem>>) attributes {dimension_semantics = [#tpu.dimension_semantics<parallel>], iteration_bounds = array<i64: 1>, scalar_prefetch = 0 : i64, scratch_operands = 0 : i64, tpu.core_type = #tpu.core_type<tc>, window_params = [{transform_indices = @transform_0, window_bounds = array<i64: 2, 1>}, {pipeline_mode = #tpu.pipeline_mode<synchronous>, transform_indices = @transform_1, window_bounds = array<i64: 1, 256>}, {pipeline_mode = #tpu.pipeline_mode<synchronous>, transform_indices = @transform_2, window_bounds = array<i64: 1, 256>}, {transform_indices = @transform_3, window_bounds = array<i64: 2, 256>}]} {
    %c0 = arith.constant 0 : index
    %c0_0 = arith.constant 0 : index
    %0 = vector.load %arg3[%c0, %c0_0] : memref<1x256xi32, #tpu.memory_space<vmem>>, vector<1x256xi32>
    %c0_1 = arith.constant 0 : index
    %c0_2 = arith.constant 0 : index
    %1 = vector.load %arg1[%c0_1, %c0_2] : memref<2x1xi32, #tpu.memory_space<vmem>>, vector<2x1xi32>
    %2 = vector.broadcast %0 : vector<1x256xi32> to vector<2x256xi32>
    %3 = vector.broadcast %1 : vector<2x1xi32> to vector<2x256xi32>
    %4 = arith.cmpi slt, %2, %3 : vector<2x256xi32>
    %c0_3 = arith.constant 0 : index
    %c0_4 = arith.constant 0 : index
    %5 = vector.load %arg2[%c0_3, %c0_4] : memref<1x256xf32, #tpu.memory_space<vmem>>, vector<1x256xf32>
    %cst = arith.constant 0.000000e+00 : f32
    %6 = vector.shape_cast %5 : vector<1x256xf32> to vector<1x256xf32>
    %7 = vector.broadcast %6 : vector<1x256xf32> to vector<2x256xf32>
    %8 = vector.broadcast %cst : f32 to vector<2x256xf32>
    %9 = arith.select %4, %7, %8 : vector<2x256xi1>, vector<2x256xf32>
    %c0_5 = arith.constant 0 : index
    %c0_6 = arith.constant 0 : index
    %10 = vector.load %arg4[%c0_5, %c0_6] : memref<2x256xf32, #tpu.memory_space<vmem>>, vector<2x256xf32>
    tpu.vector_store %arg4[%c0_5, %c0_6], %9 {strides = array<i32>} : memref<2x256xf32, #tpu.memory_space<vmem>>, vector<2x256xf32>,
    return
  }
  func.func @transform_0(%arg0: i32) -> (i32, i32) {
    %c0_i32 = arith.constant 0 : i32
    %c0_i32_0 = arith.constant 0 : i32
    return %arg0, %c0_i32 : i32, i32
  }
  func.func @transform_1(%arg0: i32) -> (i32, i32) {
    %c0_i32 = arith.constant 0 : i32
    %c0_i32_0 = arith.constant 0 : i32
    %c0_i32_1 = arith.constant 0 : i32
    return %c0_i32, %c0_i32_0 : i32, i32
  }
  func.func @transform_2(%arg0: i32) -> (i32, i32) {
    %c0_i32 = arith.constant 0 : i32
    %c0_i32_0 = arith.constant 0 : i32
    %c0_i32_1 = arith.constant 0 : i32
    return %c0_i32, %c0_i32_0 : i32, i32
  }
  func.func @transform_3(%arg0: i32) -> (i32, i32) {
    %c0_i32 = arith.constant 0 : i32
    %c0_i32_0 = arith.constant 0 : i32
    return %arg0, %c0_i32 : i32, i32
  }
}

</mosaic_0001>

<bundles_post_ra>
// kernel: tpu_custom_call.1
= control target key start
LH: loop header
LB: loop body
LE: loop exit
PB: predicated region body
PF: predicated region fallthrough
CT: control target
= control target key end

     0   :  { %v96_v1 = vmov 0   ;;  %s130_s0 = inlined_call_operand.vmem [shape: s32[2,1], index: 0, kind: input, shape index: {}]   ;;  %s131_s1 = inlined_call_operand.vmem [shape: f32[1,256], index: 1, kind: input, shape index: {}]   ;;  %s132_s2 = inlined_call_operand.vmem [shape: s32[1,256], index: 2, kind: input, shape index: {}]   ;;  %s133_s3 = inlined_call_operand.hbm [shape: f32[2,256], index: 3, kind: output, shape index: {}]  }
   0x1   :  { %v16_v0 = vld [vmem:[%s130_s0] sm:$0x3]  ;;  %73 = vset.pattern.permute.xlu0 %v96_v1 }
   0x2   :  { %8 = vsyncpa [#allocation3], 0  ;;  %26 = vperm.xlu0 %73, %v16_v0   ;;  %v17_v2 = vlaneseq  ;;  %v15_v6 = vld [vmem:[%s132_s2] sm:$0x3]  ;;  %s97_s0 = smov [#allocation2]  }
   0x3   :  { %v30_v7 = vld [vmem:[%s131_s1] sm:$0x3]  ;;  %s62_s18 = sshll.u32 %s97_s0, 4  ;;  %s63_s18 = int_to_ptr.vmem [resolvable:$true] %s62_s18 }
   0x4   :  { %v18_v3 = vshrl.u32 %v17_v2, 7  ;;  %s74_s19 = scalar_lea.vmem %s63_s18, 64  ;;  %p79_p1 = scmp.lt.s32.totalorder %s63_s18, %s63_s18 }
   0x5   :  { %p75_p0 = scmp.ne.s32.totalorder %s63_s18, %s74_s19  ;;  %p80_p2 = scmp.lt.s32.totalorder %s74_s19, %s74_s19 }
   0x6   :  { %v19_v4 = vsub.s32 0, %v18_v3  ;;  %v23_v5 = vsub.s32 1, %v18_v3 }
   0x7   :  { %p81_p3 = por %p80_p2, %p79_p1 }
   0x8   :  { %v20_v8 = vrot.slane %v15_v6, %v19_v4  ;;  %v24_v9 = vrot.slane %v15_v6, %v23_v5  ;;  %v35_v10 = vrot.slane %v30_v7, %v19_v4  ;;  %v39_v11 = vrot.slane %v30_v7, %v23_v5 }
   0x9   :  { %p82_p4 = pnand %p81_p3, %p75_p0 }
  0x7d   :  { %v27_v12 = vpop.permute.xlu0 %26 }
  0x7e   :  { %vm28_vm0 = vcmp.lt.s32.totalorder %v20_v8, %v27_v12  ;;  %vm29_vm1 = vcmp.lt.s32.totalorder %v24_v9, %v27_v12 }
  0x7f   :  { %v42_v13 = vsel %vm28_vm0, %v35_v10, 0.0  ;;  %v43_v14 = vsel %vm29_vm1, %v39_v11, 0.0 }
  0x80   :  { %v46_v15 = vcombine.low %v42_v13, %v43_v14 }
  0x82   :  { %70 = vst.sshfl [vmem:[#allocation2] sm:$0x33 pattern:$0x76325410] %v46_v15 }
  0x83   :  { %85 = shalt.err (!%p82_p4)
}
  0x84   :  { %65 = dma.vmem_to_hbm [thread:$0]  %s63_s18, 64, %s133_s3, [#allocation3]  }
  0x85   :  { %94 = dma.done.wait [#allocation3], 64  }
  0x86   :  { %95 = vsyncadd [#allocation3], 4294967232 }
  0x87   :  { %69 = vsyncpa [#allocation3], 1 }

</bundles_post_ra>
